<compile_context>
chip_gen: v7x
topology: tpu7x:2x2x1
jax: 0.10.0
libtpu: 0.0.40
codegen_flags: <defaults>
</compile_context>

<pallas_src>
import functools
import math

import jax
import jax.numpy as jnp
from jax.experimental import pallas as pl
from jax.experimental.pallas import tpu as pltpu


# ----------------------------------------------------------------------------
# RMSNorm
# ----------------------------------------------------------------------------
def _rmsnorm_kernel(x_ref, w_ref, o_ref, *, eps):
    x = x_ref[...].astype(jnp.float32)
    var = jnp.mean(x * x, axis=-1, keepdims=True)
    xn = x * jax.lax.rsqrt(var + eps)
    # match LlamaRMSNorm: weight * normed.to(input_dtype)
    o_ref[...] = (w_ref[...] * xn.astype(o_ref.dtype)).astype(o_ref.dtype)


def rmsnorm(x2d, weight, *, eps, tm=256):
    M, H = x2d.shape
    tm = min(tm, M)
    assert M % tm == 0
    w2d = weight.reshape(1, H)
    return pl.pallas_call(
        functools.partial(_rmsnorm_kernel, eps=eps),
        out_shape=jax.ShapeDtypeStruct((M, H), x2d.dtype),
        grid_spec=pltpu.PrefetchScalarGridSpec(
            num_scalar_prefetch=0,
            grid=(M // tm,),
            in_specs=[
                pl.BlockSpec((tm, H), lambda i: (i, 0)),
                pl.BlockSpec((1, H), lambda i: (0, 0)),
            ],
            out_specs=pl.BlockSpec((tm, H), lambda i: (i, 0)),
        ),
        compiler_params=pltpu.CompilerParams(dimension_semantics=("parallel",)),
    )(x2d, w2d)


# ----------------------------------------------------------------------------
# Linear: out = x @ W^T (+ residual), W in PyTorch (out_features, in_features)
# ----------------------------------------------------------------------------
_NT = (((1,), (1,)), ((), ()))  # contract last dims of both operands (A @ B^T)


def _linear_kernel(x_ref, w_ref, o_ref):
    o_ref[...] = jax.lax.dot_general(
        x_ref[...], w_ref[...], _NT, preferred_element_type=jnp.float32
    ).astype(o_ref.dtype)


def _linear_residual_kernel(x_ref, w_ref, res_ref, o_ref):
    y = jax.lax.dot_general(
        x_ref[...], w_ref[...], _NT, preferred_element_type=jnp.float32)
    # TODO(synk): for world_size > 1, all-reduce (psum / ring RDMA) the partial
    # sum across the TP axis BEFORE adding the residual.
    o_ref[...] = (y + res_ref[...].astype(jnp.float32)).astype(o_ref.dtype)


def linear(x2d, w, residual=None, *, tm=256, tn=256):
    M, H = x2d.shape
    N, H2 = w.shape
    assert H == H2
    tm = min(tm, M)
    tn = min(tn, N)
    assert M % tm == 0 and N % tn == 0
    grid = (M // tm, N // tn)

    x_spec = pl.BlockSpec((tm, H), lambda i, j: (i, 0))
    w_spec = pl.BlockSpec((tn, H), lambda i, j: (j, 0))
    o_spec = pl.BlockSpec((tm, tn), lambda i, j: (i, j))

    itm = x2d.dtype.itemsize
    cost = pl.CostEstimate(
        flops=2 * M * N * H,
        transcendentals=0,
        bytes_accessed=(M * H + M * N) * itm + N * H * w.dtype.itemsize,
    )

    if residual is None:
        kernel = _linear_kernel
        in_specs = [x_spec, w_spec]
        args = (x2d, w)
    else:
        assert residual.shape == (M, N)
        kernel = _linear_residual_kernel
        in_specs = [x_spec, w_spec, pl.BlockSpec((tm, tn), lambda i, j: (i, j))]
        args = (x2d, w, residual)

    return pl.pallas_call(
        kernel,
        out_shape=jax.ShapeDtypeStruct((M, N), x2d.dtype),
        grid_spec=pltpu.PrefetchScalarGridSpec(
            num_scalar_prefetch=0, grid=grid, in_specs=in_specs, out_specs=o_spec),
        compiler_params=pltpu.CompilerParams(
            dimension_semantics=("parallel", "parallel")),
        cost_estimate=cost,
    )(*args)


# ----------------------------------------------------------------------------
# RoPE + causal flash attention (GQA-aware)
# ----------------------------------------------------------------------------
def _rotate_half(x):
    d = x.shape[-1]
    x1 = x[..., : d // 2]
    x2 = x[..., d // 2:]
    return jnp.concatenate([-x2, x1], axis=-1)


def _attn_kernel(q_ref, k_ref, v_ref, cq_ref, sq_ref, ck_ref, sk_ref,
                 o_ref, m_sc, l_sc, acc_sc, *, scale):
    tq = q_ref.shape[0]
    tk = k_ref.shape[0]
    qi = pl.program_id(2)
    ki = pl.program_id(3)

    @pl.when(ki == 0)
    def _():
        m_sc[...] = jnp.full_like(m_sc[...], -1e30)
        l_sc[...] = jnp.zeros_like(l_sc[...])
        acc_sc[...] = jnp.zeros_like(acc_sc[...])

    q_start = qi * tq
    k_start = ki * tk

    # Skip kv tiles that lie entirely in the (masked) future.
    @pl.when(k_start <= q_start + (tq - 1))
    def _():
        q = q_ref[...].astype(jnp.float32)
        k = k_ref[...].astype(jnp.float32)
        # rotary embedding (applied per tile; cos/sin tiles follow q/k tiles)
        q = q * cq_ref[...].astype(jnp.float32) + _rotate_half(q) * sq_ref[...].astype(jnp.float32)
        k = k * ck_ref[...].astype(jnp.float32) + _rotate_half(k) * sk_ref[...].astype(jnp.float32)

        s = jax.lax.dot_general(q, k, _NT, preferred_element_type=jnp.float32) * scale
        q_pos = q_start + jax.lax.broadcasted_iota(jnp.int32, (tq, tk), 0)
        k_pos = k_start + jax.lax.broadcasted_iota(jnp.int32, (tq, tk), 1)
        s = jnp.where(q_pos >= k_pos, s, -1e30)

        m_prev = m_sc[...]
        m_new = jnp.maximum(m_prev, jnp.max(s, axis=-1, keepdims=True))
        alpha = jnp.exp(m_prev - m_new)
        p = jnp.exp(s - m_new)
        l_sc[...] = alpha * l_sc[...] + jnp.sum(p, axis=-1, keepdims=True)
        v = v_ref[...].astype(jnp.float32)
        acc_sc[...] = alpha * acc_sc[...] + jnp.dot(
            p, v, preferred_element_type=jnp.float32)
        m_sc[...] = m_new

    @pl.when(ki == pl.num_programs(3) - 1)
    def _():
        o_ref[...] = (acc_sc[...] / l_sc[...]).astype(o_ref.dtype)


def causal_attention(q, k, v, cos, sin, *, tq=256, tk=256):
    """q: (B, NQ, T, hd); k, v: (B, NKV, T, hd); cos, sin: (T, hd)."""
    B, NQ, T, hd = q.shape
    NKV = k.shape[1]
    assert NQ % NKV == 0
    q_per_kv = NQ // NKV
    tq = min(tq, T)
    tk = min(tk, T)
    assert T % tq == 0 and T % tk == 0
    scale = 1.0 / math.sqrt(hd)
    grid = (B, NQ, T // tq, T // tk)

    q_spec = pl.BlockSpec((None, None, tq, hd), lambda b, h, i, j: (b, h, i, 0))
    kv_spec = pl.BlockSpec((None, None, tk, hd),
                           lambda b, h, i, j: (b, h // q_per_kv, j, 0))
    cq_spec = pl.BlockSpec((tq, hd), lambda b, h, i, j: (i, 0))
    ck_spec = pl.BlockSpec((tk, hd), lambda b, h, i, j: (j, 0))
    o_spec = pl.BlockSpec((None, None, tq, hd), lambda b, h, i, j: (b, h, i, 0))

    return pl.pallas_call(
        functools.partial(_attn_kernel, scale=scale),
        out_shape=jax.ShapeDtypeStruct((B, NQ, T, hd), q.dtype),
        grid_spec=pltpu.PrefetchScalarGridSpec(
            num_scalar_prefetch=0,
            grid=grid,
            in_specs=[q_spec, kv_spec, kv_spec, cq_spec, cq_spec, ck_spec, ck_spec],
            out_specs=o_spec,
            scratch_shapes=[
                pltpu.VMEM((tq, 1), jnp.float32),   # running max
                pltpu.VMEM((tq, 1), jnp.float32),   # running denom
                pltpu.VMEM((tq, hd), jnp.float32),  # output accumulator
            ],
        ),
        compiler_params=pltpu.CompilerParams(
            dimension_semantics=("parallel", "parallel", "parallel", "arbitrary")),
    )(q, k, v, cos, sin, cos, sin)


# ----------------------------------------------------------------------------
# Fused gate/up/SiLU/down MLP, intermediate dim tiled, fused residual add
# ----------------------------------------------------------------------------
def _mlp_kernel(x_ref, wg_ref, wu_ref, wd_ref, res_ref, o_ref, acc_ref):
    j = pl.program_id(1)

    @pl.when(j == 0)
    def _():
        acc_ref[...] = jnp.zeros_like(acc_ref)

    x = x_ref[...]
    g = jax.lax.dot_general(x, wg_ref[...], _NT, preferred_element_type=jnp.float32)
    u = jax.lax.dot_general(x, wu_ref[...], _NT, preferred_element_type=jnp.float32)
    h = (g * jax.nn.sigmoid(g)) * u                 # SiLU(g) * u, f32 on VPU/EUP
    acc_ref[...] += jax.lax.dot_general(
        h.astype(wd_ref.dtype), wd_ref[...], _NT, preferred_element_type=jnp.float32)

    @pl.when(j == pl.num_programs(1) - 1)
    def _():
        # TODO(synk): for world_size > 1, all-reduce the f32 partial sum across
        # the TP axis (psum / ring RDMA) before adding the residual.
        o_ref[...] = (acc_ref[...] + res_ref[...].astype(jnp.float32)).astype(o_ref.dtype)


def tp_llama_mlp(x2d, wg, wu, wd, residual2d, *, tm=256, ti=512,
                 vmem_limit_bytes=48 * 1024 * 1024):
    """x2d: (M, H); wg/wu: (I_local, H); wd: (H, I_local); residual2d: (M, H)."""
    M, H = x2d.shape
    I_local = wg.shape[0]
    assert wg.shape == (I_local, H) and wu.shape == (I_local, H)
    assert wd.shape == (H, I_local) and residual2d.shape == (M, H)
    tm = min(tm, M)
    ti = min(ti, I_local)
    assert M % tm == 0 and I_local % ti == 0
    grid = (M // tm, I_local // ti)

    cost = pl.CostEstimate(
        flops=6 * M * H * I_local,
        transcendentals=M * I_local,
        bytes_accessed=3 * M * H * x2d.dtype.itemsize
        + (wg.size + wu.size + wd.size) * wg.dtype.itemsize,
    )

    return pl.pallas_call(
        _mlp_kernel,
        out_shape=jax.ShapeDtypeStruct((M, H), x2d.dtype),
        grid_spec=pltpu.PrefetchScalarGridSpec(
            num_scalar_prefetch=0,
            grid=grid,
            in_specs=[
                pl.BlockSpec((tm, H), lambda i, j: (i, 0)),   # x tile
                pl.BlockSpec((ti, H), lambda i, j: (j, 0)),   # gate weight tile
                pl.BlockSpec((ti, H), lambda i, j: (j, 0)),   # up weight tile
                pl.BlockSpec((H, ti), lambda i, j: (0, j)),   # down weight tile
                pl.BlockSpec((tm, H), lambda i, j: (i, 0)),   # residual tile
            ],
            out_specs=pl.BlockSpec((tm, H), lambda i, j: (i, 0)),
            scratch_shapes=[pltpu.VMEM((tm, H), jnp.float32)],
        ),
        compiler_params=pltpu.CompilerParams(
            dimension_semantics=("parallel", "arbitrary"),
            vmem_limit_bytes=vmem_limit_bytes,
        ),
        cost_estimate=cost,
    )(x2d, wg, wu, wd, residual2d)


# ----------------------------------------------------------------------------
# Full decoder layer forward
# ----------------------------------------------------------------------------
def tp_llama_decoder_layer(hidden_states, params, position_embeddings, *,
                           num_heads, num_kv_heads, head_dim):
    """hidden_states: (B, T, H); position_embeddings: (cos, sin) each (T, head_dim)."""
    B, T, H = hidden_states.shape
    M = B * T
    cos, sin = position_embeddings
    x2d = hidden_states.reshape(M, H)

    # ---- self-attention block ----
    h = rmsnorm(x2d, params["input_ln_weight"], eps=params["input_ln_eps"])
    q = linear(h, params["wq"])                 # (M, NQ*hd)
    k = linear(h, params["wk"])                 # (M, NKV*hd)
    v = linear(h, params["wv"])                 # (M, NKV*hd)
    q4 = q.reshape(B, T, num_heads, head_dim).transpose(0, 2, 1, 3)
    k4 = k.reshape(B, T, num_kv_heads, head_dim).transpose(0, 2, 1, 3)
    v4 = v.reshape(B, T, num_kv_heads, head_dim).transpose(0, 2, 1, 3)
    # TODO(synk): past_key_value (KV cache) update is not implemented (prefill only).
    attn = causal_attention(q4, k4, v4, cos, sin)           # (B, NQ, T, hd)
    attn2d = attn.transpose(0, 2, 1, 3).reshape(M, num_heads * head_dim)
    # o_proj + (identity world_size=1) TP all-reduce + residual add, fused.
    h1 = linear(attn2d, params["wo"], residual=x2d)

    # ---- MLP block ----
    h2 = rmsnorm(h1, params["post_ln_weight"], eps=params["post_ln_eps"])
    out2d = tp_llama_mlp(h2, params["wg"], params["wu"], params["wd"], residual2d=h1)
    return out2d.reshape(B, T, H)


# ----------------------------------------------------------------------------
# Pure-JAX reference (mirrors the PyTorch module with world_size=1, num_blocks=1)
# ----------------------------------------------------------------------------
def _reference_decoder(hidden_states, params, position_embeddings, *,
                       num_heads, num_kv_heads, head_dim):
    B, T, H = hidden_states.shape
    cos, sin = position_embeddings
    hp = jax.lax.Precision.HIGHEST

    def rms(x, w, eps):
        xf = x.astype(jnp.float32)
        var = jnp.mean(xf * xf, axis=-1, keepdims=True)
        return w * (xf * jax.lax.rsqrt(var + eps)).astype(x.dtype)

    def rotate_half(x):
        d = x.shape[-1]
        return jnp.concatenate([-x[..., d // 2:], x[..., : d // 2]], axis=-1)

    residual = hidden_states
    h = rms(hidden_states, params["input_ln_weight"], params["input_ln_eps"])
    q = jnp.einsum("bth,nh->btn", h, params["wq"], precision=hp)
    k = jnp.einsum("bth,nh->btn", h, params["wk"], precision=hp)
    v = jnp.einsum("bth,nh->btn", h, params["wv"], precision=hp)
    q = q.reshape(B, T, num_heads, head_dim).transpose(0, 2, 1, 3)
    k = k.reshape(B, T, num_kv_heads, head_dim).transpose(0, 2, 1, 3)
    v = v.reshape(B, T, num_kv_heads, head_dim).transpose(0, 2, 1, 3)
    cos_b, sin_b = cos[None, None], sin[None, None]
    q = q * cos_b + rotate_half(q) * sin_b
    k = k * cos_b + rotate_half(k) * sin_b
    rep = num_heads // num_kv_heads
    k = jnp.repeat(k, rep, axis=1)
    v = jnp.repeat(v, rep, axis=1)
    s = jnp.einsum("bhqd,bhkd->bhqk", q, k, precision=hp) / math.sqrt(head_dim)
    mask = jnp.tril(jnp.ones((T, T), dtype=bool))
    s = jnp.where(mask[None, None], s, -jnp.inf)
    p = jax.nn.softmax(s, axis=-1)
    o = jnp.einsum("bhqk,bhkd->bhqd", p, v, precision=hp)
    o = o.transpose(0, 2, 1, 3).reshape(B, T, num_heads * head_dim)
    o = jnp.einsum("btn,hn->bth", o, params["wo"], precision=hp)
    hidden = residual + o

    residual = hidden
    h2 = rms(hidden, params["post_ln_weight"], params["post_ln_eps"])
    g = jnp.einsum("bth,ih->bti", h2, params["wg"], precision=hp)
    u = jnp.einsum("bth,ih->bti", h2, params["wu"], precision=hp)
    mh = jax.nn.silu(g) * u
    d = jnp.einsum("bti,hi->bth", mh, params["wd"], precision=hp)
    return residual + d


if __name__ == "__main__":
    # Small LlamaConfig-like shapes: hidden=32, heads=2, kv_heads=1 (GQA),
    # head_dim=16, intermediate=64, world_size=1, num_blocks=1, no biases.
    B, T, H = 2, 8, 32
    num_heads, num_kv_heads = 2, 1
    head_dim = H // num_heads
    I = 64
    eps = 1e-6

    key = jax.random.PRNGKey(0)
    ks = jax.random.split(key, 10)
    x = jax.random.normal(ks[0], (B, T, H), dtype=jnp.float32)
    wq = jax.random.normal(ks[1], (num_heads * head_dim, H), jnp.float32) * 0.05
    wk = jax.random.normal(ks[2], (num_kv_heads * head_dim, H), jnp.float32) * 0.05
    wv = jax.random.normal(ks[3], (num_kv_heads * head_dim, H), jnp.float32) * 0.05
    wo = jax.random.normal(ks[4], (H, num_heads * head_dim), jnp.float32) * 0.05
    wg = jax.random.normal(ks[5], (I, H), jnp.float32) * 0.05
    wu = jax.random.normal(ks[6], (I, H), jnp.float32) * 0.05
    wd = jax.random.normal(ks[7], (H, I), jnp.float32) * 0.05
    in_ln = 1.0 + 0.1 * jax.random.normal(ks[8], (H,), jnp.float32)
    post_ln = 1.0 + 0.1 * jax.random.normal(ks[9], (H,), jnp.float32)

    # Standard Llama RoPE tables, shape (T, head_dim).
    inv_freq = 1.0 / (10000.0 ** (jnp.arange(0, head_dim, 2, dtype=jnp.float32) / head_dim))
    freqs = jnp.outer(jnp.arange(T, dtype=jnp.float32), inv_freq)
    emb = jnp.concatenate([freqs, freqs], axis=-1)
    cos, sin = jnp.cos(emb), jnp.sin(emb)

    params = dict(wq=wq, wk=wk, wv=wv, wo=wo, wg=wg, wu=wu, wd=wd,
                  input_ln_weight=in_ln, input_ln_eps=eps,
                  post_ln_weight=post_ln, post_ln_eps=eps)

    out = tp_llama_decoder_layer(x, params, (cos, sin),
                                 num_heads=num_heads,
                                 num_kv_heads=num_kv_heads,
                                 head_dim=head_dim)
    out = jax.block_until_ready(out)

    ref = _reference_decoder(x, params, (cos, sin),
                             num_heads=num_heads,
                             num_kv_heads=num_kv_heads,
                             head_dim=head_dim)
    assert out.shape == (B, T, H)
    err = float(jnp.max(jnp.abs(out - ref)))
    assert jnp.allclose(out, ref, atol=2e-3, rtol=2e-3), f"mismatch vs reference, max |err|={err}"

    print("KERNEL_OK")
</pallas_src>

<mosaic_0001>
module attributes {stable_mosaic.version = 11 : i64} {
  func.func @_rmsnorm_kernel(%arg0: i32, %arg1: memref<16x32xf32, #tpu.memory_space<vmem>>, %arg2: memref<1x32xf32, #tpu.memory_space<vmem>>, %arg3: memref<16x32xf32, #tpu.memory_space<vmem>>) attributes {dimension_semantics = [#tpu.dimension_semantics<parallel>], iteration_bounds = array<i64: 1>, scalar_prefetch = 0 : i64, scratch_operands = 0 : i64, tpu.core_type = #tpu.core_type<tc>, window_params = [{transform_indices = @transform_0, window_bounds = array<i64: 16, 32>}, {pipeline_mode = #tpu.pipeline_mode<synchronous>, transform_indices = @transform_1, window_bounds = array<i64: 1, 32>}, {transform_indices = @transform_2, window_bounds = array<i64: 16, 32>}]} {
    %c0 = arith.constant 0 : index
    %c0_0 = arith.constant 0 : index
    %0 = vector.load %arg1[%c0, %c0_0] : memref<16x32xf32, #tpu.memory_space<vmem>>, vector<16x32xf32>
    %1 = arith.mulf %0, %0 : vector<16x32xf32>
    %cst = arith.constant dense<0.000000e+00> : vector<16xf32>
    %2 = vector.multi_reduction <add>, %1, %cst [1] : vector<16x32xf32> to vector<16xf32>
    %3 = vector.shape_cast %2 : vector<16xf32> to vector<16x1xf32>
    %cst_1 = arith.constant 3.200000e+01 : f32
    %4 = vector.broadcast %cst_1 : f32 to vector<16x1xf32>
    %5 = arith.divf %3, %4 : vector<16x1xf32>
    %cst_2 = arith.constant 9.99999997E-7 : f32
    %6 = vector.broadcast %cst_2 : f32 to vector<16x1xf32>
    %7 = arith.addf %5, %6 : vector<16x1xf32>
    %8 = math.rsqrt %7 : vector<16x1xf32>
    %9 = vector.broadcast %8 : vector<16x1xf32> to vector<16x32xf32>
    %10 = arith.mulf %0, %9 : vector<16x32xf32>
    %c0_3 = arith.constant 0 : index
    %c0_4 = arith.constant 0 : index
    %11 = vector.load %arg2[%c0_3, %c0_4] : memref<1x32xf32, #tpu.memory_space<vmem>>, vector<1x32xf32>
    %12 = vector.broadcast %11 : vector<1x32xf32> to vector<16x32xf32>
    %13 = arith.mulf %12, %10 : vector<16x32xf32>
    %c0_5 = arith.constant 0 : index
    %c0_6 = arith.constant 0 : index
    %14 = vector.load %arg3[%c0_5, %c0_6] : memref<16x32xf32, #tpu.memory_space<vmem>>, vector<16x32xf32>
    tpu.vector_store %arg3[%c0_5, %c0_6], %13 {strides = array<i32>} : memref<16x32xf32, #tpu.memory_space<vmem>>, vector<16x32xf32>,
    return
  }
  func.func @transform_0(%arg0: i32) -> (i32, i32) {
    %c0_i32 = arith.constant 0 : i32
    %c0_i32_0 = arith.constant 0 : i32
    return %arg0, %c0_i32 : i32, i32
  }
  func.func @transform_1(%arg0: i32) -> (i32, i32) {
    %c0_i32 = arith.constant 0 : i32
    %c0_i32_0 = arith.constant 0 : i32
    %c0_i32_1 = arith.constant 0 : i32
    return %c0_i32, %c0_i32_0 : i32, i32
  }
  func.func @transform_2(%arg0: i32) -> (i32, i32) {
    %c0_i32 = arith.constant 0 : i32
    %c0_i32_0 = arith.constant 0 : i32
    return %arg0, %c0_i32 : i32, i32
  }
}

</mosaic_0001>

<bundles_post_ra>
// kernel: tpu_custom_call.1
= control target key start
LH: loop header
LB: loop body
LE: loop exit
PB: predicated region body
PF: predicated region fallthrough
CT: control target
= control target key end

     0   :  { %7 = vsyncpa [#allocation3], 0  ;;  %s187_s0 = inlined_call_operand.hbm [shape: f32[16,32], index: 0, kind: input, shape index: {}]   ;;  %s188_s1 = inlined_call_operand.vmem [shape: f32[1,32], index: 1, kind: input, shape index: {}]   ;;  %s189_s2 = inlined_call_operand.hbm [shape: f32[16,32], index: 2, kind: output, shape index: {}]  }
   0x1   :  { %8 = vsyncpa [#allocation4], 0  ;;  %s131_s9 = smov [#allocation2]   ;;  %s83_s13 = scalar_lea.hbm %s187_s0, 256 }
   0x2   :  { %s14_s10 = sshll.u32 %s131_s9, 4  ;;  %p84_p0 = scmp.ne.s32.totalorder %s187_s0, %s83_s13  ;;  %s15_s10 = int_to_ptr.vmem [resolvable:$true] %s14_s10 }
   0x3   :  { %p87_p1 = scmp.lt.u32.totalorder %s83_s13, %s187_s0 }
   0x5   :  { %p89_p2 = pnand %p87_p1, %p84_p0 }
   0x7   :  { %92 = shalt.err (!%p89_p2)
}
   0x8   :  { %s93_s18 = scalar_lea.vmem %s15_s10, 256  ;;  %p98_p4 = scmp.lt.s32.totalorder %s15_s10, %s15_s10 }
   0x9   :  { %p94_p3 = scmp.ne.s32.totalorder %s15_s10, %s93_s18  ;;  %p99_p5 = scmp.lt.s32.totalorder %s93_s18, %s93_s18 }
   0xb   :  { %p100_p6 = por %p99_p5, %p98_p4 }
   0xd   :  { %p101_p7 = pnand %p100_p6, %p94_p3 }
   0xf   :  { %104 = shalt.err (!%p101_p7)
}
  0x10   :  { %s132_s19 = smov 128   ;;  %s133_s20 = smov 8  }
  0x11   :  { %20 = dma.hbm_to_vmem [thread:$0]  %s187_s0, 256, %s15_s10, [#allocation3], %s132_s19, %s132_s19, %s133_s20  }
  0x12   :  { %127 = dma.done.wait [#allocation3], 256  }
  0x13   :  { %128 = vsyncadd [#allocation3], 4294967040  ;;  %v26_v0 = vld [vmem:[#allocation2] sm:$0xff]  ;;  %vm30_vm0 = vcmask 261120   ;;  %v27_v1 = vld [vmem:[#allocation2 + $0x8] sm:$0xff]  ;;  %s134_s24 = smov [#allocation5]  }
  0x14   :  { %v28_v2 = vmul.f32 %v26_v0, %v26_v0  ;;  %v29_v3 = vmul.f32 %v27_v1, %v27_v1  ;;  %v74_v13 = vld [vmem:[%s188_s1] ss:$0 sm:$0xff]  ;;  %s62_s25 = sshll.u32 %s134_s24, 4  ;;  %s63_s25 = int_to_ptr.vmem [resolvable:$true] %s62_s25 }
  0x15   :  { %s105_s26 = scalar_lea.vmem %s63_s25, 256  ;;  %p110_p9 = scmp.lt.s32.totalorder %s63_s25, %s63_s25 }
  0x16   :  { %v31_v4 = vsel %vm30_vm0, %v28_v2, 0.0  ;;  %v34_v5 = vsel %vm30_vm0, %v29_v3, 0.0  ;;  %p106_p8 = scmp.ne.s32.totalorder %s63_s25, %s105_s26  ;;  %p111_p10 = scmp.lt.s32.totalorder %s105_s26, %s105_s26 }
  0x17   :  { %32 = vadd.xlane.f32.xlu0 %v31_v4 }
  0x18   :  { %p112_p11 = por %p111_p10, %p110_p9 }
  0x1a   :  { %p113_p12 = pnand %p112_p11, %p106_p8 }
  0x1b   :  { %35 = vadd.xlane.f32.xlu0 %v34_v5 }
  0xa4   :  { %v33_v6 = vpop.xlane.xlu0 %32 }
  0xa5   :  { %v38_v7 = vmul.f32 0.03125, %v33_v6 }
  0xa7   :  { %v40_v8 = vadd.f32 1e-06, %v38_v7 }
  0xa8   :  { %v36_v9 = vpop.xlane.xlu0 %35 }
  0xa9   :  { %79 = vrsqrt.f32 %v40_v8  ;;  %v39_v10 = vmul.f32 0.03125, %v36_v9 }
  0xab   :  { %v41_v11 = vadd.f32 1e-06, %v39_v10 }
  0xad   :  { %81 = vrsqrt.f32 %v41_v11 }
  0xb3   :  { %v80_v12 = vpop.eup %79 }
  0xb4   :  { %v44_v14 = vmul.f32 %v80_v12, %v26_v0 }
  0xb6   :  { %v53_v15 = vmul.f32 %v74_v13, %v44_v14 }
  0xb7   :  { %v82_v16 = vpop.eup %81 }
  0xb8   :  { %v45_v17 = vmul.f32 %v82_v16, %v27_v1  ;;  %55 = vst.msk [vmem:[#allocation5] sm:$0xff] %vm30_vm0, %v53_v15 }
  0xba   :  { %v54_v18 = vmul.f32 %v74_v13, %v45_v17 }
  0xbc   :  { %56 = vst.msk [vmem:[#allocation5 + $0x8] sm:$0xff] %vm30_vm0, %v54_v18 }
  0xbd   :  { %116 = shalt.err (!%p113_p12)
}
  0xbe   :  { %s117_s28 = scalar_lea.hbm %s189_s2, 256 }
  0xbf   :  { %p118_p13 = scmp.ne.s32.totalorder %s189_s2, %s117_s28  ;;  %p121_p0 = scmp.lt.u32.totalorder %s117_s28, %s189_s2 }
  0xc1   :  { %p123_p1 = pnand %p121_p0, %p118_p13 }
  0xc3   :  { %126 = shalt.err (!%p123_p1)
}
  0xc4   :  { %68 = dma.vmem_to_hbm [thread:$0]  %s63_s25, 256, %s189_s2, [#allocation4], %s132_s19, %s132_s19, %s133_s20  }
  0xc5   :  { %129 = dma.done.wait [#allocation4], 256  }
  0xc6   :  { %130 = vsyncadd [#allocation4], 4294967040 }
  0xc7   :  { %72 = vsyncpa [#allocation3], 1 }
  0xc8   :  { %73 = vsyncpa [#allocation4], 1 }

</bundles_post_ra>
